<compile_context>
chip_gen: v7x
topology: tpu7x:2x2x1
jax: 0.10.0
libtpu: 0.0.40
codegen_flags: <defaults>
</compile_context>

<pallas_src>
import jax
import jax.numpy as jnp
from jax.experimental import pallas as pl
from jax.experimental.pallas import tpu as pltpu


_LANES = 128
_SUBLANES = 8
_TILE = _LANES * _SUBLANES          # minimal (8, 128) slab = 1024 elements
_MAX_BLOCK_ROWS = 4096              # (4096, 128) f32 block = 2 MiB per buffer


def _fast_recip(z):
    """1/z via EUP approx reciprocal + one Newton step (~full f32 accuracy)."""
    r = pl.reciprocal(z, approx=True)
    return r * (2.0 - z * r)


def _digamma_f32(x):
    """Branchless float32 digamma matching torch.digamma semantics."""
    fx = jnp.floor(x)
    is_int = x == fx
    is_zero = x == 0.0
    is_neg_pole = (x < 0.0) & is_int            # negative integers -> nan

    need_reflect = x < 0.5
    z = jnp.where(need_reflect, 1.0 - x, x)     # z >= 0.5 for non-pole inputs

    # Unconditional recurrence: psi(z) = psi(z + 6) - sum_{k=0}^{5} 1/(z + k).
    # After the shift z + 6 >= 6.5 for all non-pole inputs, so the asymptotic
    # series below is always in range (no masks / selects needed).
    acc = jnp.zeros_like(z)
    for k in range(6):
        acc = acc - _fast_recip(z + jnp.float32(k))
    z = z + 6.0

    # Asymptotic series: psi(z) ~ ln z - 1/(2z) - sum B_{2n} / (2n z^{2n})
    inv = _fast_recip(z)
    inv2 = inv * inv
    series = (
        jnp.log(z)
        - 0.5 * inv
        - inv2 * (1.0 / 12.0
                  - inv2 * (1.0 / 120.0
                            - inv2 * (1.0 / 252.0
                                      - inv2 * (1.0 / 240.0
                                                - inv2 * (1.0 / 132.0)))))
    )
    result = acc + series

    # Reflection psi(x) = psi(1 - x) - pi * cot(pi * x).  cot(pi*x) has period
    # 1 in x, so reduce to the fractional part (keeps accuracy for large
    # negative x, matching Cephes / torch).  cot = cos * recip(sin) saves one
    # full divide vs pi / tan(pi*x).
    frac = x - fx                               # in [0, 1)
    pif = jnp.pi * frac
    cot = jnp.cos(pif) * _fast_recip(jnp.sin(pif))
    out = jnp.where(need_reflect, result - jnp.pi * cot, result)

    # Pole / special-value semantics (torch): +0 -> -inf, -0 -> +inf,
    # negative integers -> nan, +inf -> +inf.
    sign_neg = pltpu.bitcast(x, jnp.int32) < 0  # sign bit (covers -0.0)
    zero_val = jnp.where(sign_neg, jnp.inf, -jnp.inf)
    out = jnp.where(is_neg_pole, jnp.float32(jnp.nan), out)
    out = jnp.where(is_zero, zero_val, out)
    out = jnp.where(x == jnp.inf, jnp.float32(jnp.inf), out)
    return out


def _digamma_kernel(x_ref, o_ref):
    # Cast in-kernel only: for bf16/fp16 inputs this halves HBM traffic vs a
    # wrapper-side cast pass.
    x = x_ref[...].astype(jnp.float32)
    o_ref[...] = _digamma_f32(x).astype(o_ref.dtype)


def _pick_block_rows(rows, itemsize):
    """Rows of 128 lanes per grid step: ~2 MiB per buffer max, and at least two
    grid steps when there is enough work (keeps both v7x TensorCores busy)."""
    sub = max(_SUBLANES, 32 // max(1, itemsize))  # 8 (f32) / 16 (bf16/fp16)
    if rows < 2 * sub:
        return rows                                # single full block
    if rows > 2 * _MAX_BLOCK_ROWS:
        return _MAX_BLOCK_ROWS
    half = (-(-rows // 2) + sub - 1) // sub * sub  # ceil(rows/2), sublane-aligned
    return min(_MAX_BLOCK_ROWS, half)


@jax.jit
def digamma_pallas(x):
    """Elementwise digamma via a Pallas TPU kernel (torch.digamma semantics).

    Handles arbitrary shapes, including the zero-size case of the original
    PyTorch test (returns an empty array)."""
    orig_shape = x.shape
    n = x.size

    out_dtype = x.dtype if jnp.issubdtype(x.dtype, jnp.floating) else jnp.float32

    # Zero-size case from the original PyTorch test: nothing to compute.
    if n == 0:
        return jnp.zeros(orig_shape, dtype=out_dtype)

    flat = x.reshape(-1)
    if not jnp.issubdtype(flat.dtype, jnp.floating):
        flat = flat.astype(jnp.float32)   # integer inputs: promote like torch

    # Fast path: whole number of (8,128) tiles -> pure reshape, no extra HBM
    # pad/slice passes.  Ragged tail pads the minimal amount (< 1024 elems).
    rem = n % _TILE
    padded = rem != 0
    if padded:
        # pad with 1.0 (digamma(1) is finite) to avoid spurious inf/nan work
        flat = jnp.concatenate([flat, jnp.ones((_TILE - rem,), flat.dtype)])

    x2d = flat.reshape(-1, _LANES)
    rows = x2d.shape[0]
    block_rows = _pick_block_rows(rows, x2d.dtype.itemsize)
    grid = pl.cdiv(rows, block_rows)   # ragged last block is fine (elementwise)

    out2d = pl.pallas_call(
        _digamma_kernel,
        out_shape=jax.ShapeDtypeStruct((rows, _LANES), out_dtype),
        grid_spec=pltpu.PrefetchScalarGridSpec(
            num_scalar_prefetch=0,
            grid=(grid,),
            in_specs=[pl.BlockSpec((block_rows, _LANES), lambda i: (i, 0))],
            out_specs=pl.BlockSpec((block_rows, _LANES), lambda i: (i, 0)),
        ),
        compiler_params=pltpu.CompilerParams(
            dimension_semantics=("parallel",)),
    )(x2d)

    out = out2d.reshape(-1)
    if padded:
        out = out[:n]
    return out.reshape(orig_shape)


if __name__ == "__main__":
    key = jax.random.PRNGKey(0)
    # Small NCHW-like input consistent with an elementwise math op.
    x = jax.random.normal(key, (2, 4, 16, 16), dtype=jnp.float32) * 3.0

    out = digamma_pallas(x)
    jax.block_until_ready(out)
    assert out.shape == x.shape
    assert out.dtype == x.dtype

    # Spot-check against known digamma values (exercises the ragged-tail path).
    probe = jnp.array([1.0, 0.5, 2.0, 0.25, -0.5, -1.5], dtype=jnp.float32)
    ref = jnp.array([-0.5772157, -1.9635100, 0.4227843,
                     -4.2274535, 0.0364899, 0.7031566], dtype=jnp.float32)
    got = digamma_pallas(probe)
    jax.block_until_ready(got)
    assert bool(jnp.allclose(got, ref, atol=1e-3, rtol=1e-3)), (got, ref)

    # Pole semantics: +0 -> -inf, negative integer -> nan.
    poles = jnp.array([0.0, -2.0], dtype=jnp.float32)
    pole_out = digamma_pallas(poles)
    jax.block_until_ready(pole_out)
    assert bool(pole_out[0] == -jnp.inf)
    assert bool(jnp.isnan(pole_out[1]))

    # Original "zero_size" semantics of the test case.
    x_zero = jnp.zeros((0, 4, 16, 16), dtype=jnp.float32)
    out_zero = digamma_pallas(x_zero)
    jax.block_until_ready(out_zero)
    assert out_zero.shape == (0, 4, 16, 16)

    print("KERNEL_OK")
</pallas_src>

<mosaic_0001>
module attributes {stable_mosaic.version = 11 : i64} {
  func.func @_digamma_kernel(%arg0: i32, %arg1: memref<8x128xf32, #tpu.memory_space<vmem>>, %arg2: memref<8x128xf32, #tpu.memory_space<vmem>>) attributes {dimension_semantics = [#tpu.dimension_semantics<parallel>], iteration_bounds = array<i64: 2>, scalar_prefetch = 0 : i64, scratch_operands = 0 : i64, tpu.core_type = #tpu.core_type<tc>, window_params = [{transform_indices = @transform_0, window_bounds = array<i64: 8, 128>}, {transform_indices = @transform_1, window_bounds = array<i64: 8, 128>}]} {
    %c0 = arith.constant 0 : index
    %c0_0 = arith.constant 0 : index
    %0 = vector.load %arg1[%c0, %c0_0] : memref<8x128xf32, #tpu.memory_space<vmem>>, vector<8x128xf32>
    %1 = math.floor %0 : vector<8x128xf32>
    %2 = arith.cmpf oeq, %0, %1 : vector<8x128xf32>
    %cst = arith.constant 0.000000e+00 : f32
    %3 = vector.broadcast %cst : f32 to vector<8x128xf32>
    %4 = arith.cmpf oeq, %0, %3 : vector<8x128xf32>
    %cst_1 = arith.constant 0.000000e+00 : f32
    %5 = vector.broadcast %cst_1 : f32 to vector<8x128xf32>
    %6 = arith.cmpf olt, %0, %5 : vector<8x128xf32>
    %7 = arith.andi %6, %2 : vector<8x128xi1>
    %cst_2 = arith.constant 5.000000e-01 : f32
    %8 = vector.broadcast %cst_2 : f32 to vector<8x128xf32>
    %9 = arith.cmpf olt, %0, %8 : vector<8x128xf32>
    %cst_3 = arith.constant 1.000000e+00 : f32
    %10 = vector.broadcast %cst_3 : f32 to vector<8x128xf32>
    %11 = arith.subf %10, %0 : vector<8x128xf32>
    %12 = arith.select %9, %11, %0 : vector<8x128xi1>, vector<8x128xf32>
    %cst_4 = arith.constant 0.000000e+00 : f32
    %13 = vector.broadcast %cst_4 : f32 to vector<8x128xf32>
    %cst_5 = arith.constant 0.000000e+00 : f32
    %14 = vector.broadcast %cst_5 : f32 to vector<8x128xf32>
    %15 = arith.addf %12, %14 : vector<8x128xf32>
    %16 = tpu.reciprocal %15 {approx = true} : vector<8x128xf32> -> vector<8x128xf32>
    %17 = arith.mulf %15, %16 : vector<8x128xf32>
    %cst_6 = arith.constant 2.000000e+00 : f32
    %18 = vector.broadcast %cst_6 : f32 to vector<8x128xf32>
    %19 = arith.subf %18, %17 : vector<8x128xf32>
    %20 = arith.mulf %16, %19 : vector<8x128xf32>
    %21 = arith.subf %13, %20 : vector<8x128xf32>
    %cst_7 = arith.constant 1.000000e+00 : f32
    %22 = vector.broadcast %cst_7 : f32 to vector<8x128xf32>
    %23 = arith.addf %12, %22 : vector<8x128xf32>
    %24 = tpu.reciprocal %23 {approx = true} : vector<8x128xf32> -> vector<8x128xf32>
    %25 = arith.mulf %23, %24 : vector<8x128xf32>
    %cst_8 = arith.constant 2.000000e+00 : f32
    %26 = vector.broadcast %cst_8 : f32 to vector<8x128xf32>
    %27 = arith.subf %26, %25 : vector<8x128xf32>
    %28 = arith.mulf %24, %27 : vector<8x128xf32>
    %29 = arith.subf %21, %28 : vector<8x128xf32>
    %cst_9 = arith.constant 2.000000e+00 : f32
    %30 = vector.broadcast %cst_9 : f32 to vector<8x128xf32>
    %31 = arith.addf %12, %30 : vector<8x128xf32>
    %32 = tpu.reciprocal %31 {approx = true} : vector<8x128xf32> -> vector<8x128xf32>
    %33 = arith.mulf %31, %32 : vector<8x128xf32>
    %cst_10 = arith.constant 2.000000e+00 : f32
    %34 = vector.broadcast %cst_10 : f32 to vector<8x128xf32>
    %35 = arith.subf %34, %33 : vector<8x128xf32>
    %36 = arith.mulf %32, %35 : vector<8x128xf32>
    %37 = arith.subf %29, %36 : vector<8x128xf32>
    %cst_11 = arith.constant 3.000000e+00 : f32
    %38 = vector.broadcast %cst_11 : f32 to vector<8x128xf32>
    %39 = arith.addf %12, %38 : vector<8x128xf32>
    %40 = tpu.reciprocal %39 {approx = true} : vector<8x128xf32> -> vector<8x128xf32>
    %41 = arith.mulf %39, %40 : vector<8x128xf32>
    %cst_12 = arith.constant 2.000000e+00 : f32
    %42 = vector.broadcast %cst_12 : f32 to vector<8x128xf32>
    %43 = arith.subf %42, %41 : vector<8x128xf32>
    %44 = arith.mulf %40, %43 : vector<8x128xf32>
    %45 = arith.subf %37, %44 : vector<8x128xf32>
    %cst_13 = arith.constant 4.000000e+00 : f32
    %46 = vector.broadcast %cst_13 : f32 to vector<8x128xf32>
    %47 = arith.addf %12, %46 : vector<8x128xf32>
    %48 = tpu.reciprocal %47 {approx = true} : vector<8x128xf32> -> vector<8x128xf32>
    %49 = arith.mulf %47, %48 : vector<8x128xf32>
    %cst_14 = arith.constant 2.000000e+00 : f32
    %50 = vector.broadcast %cst_14 : f32 to vector<8x128xf32>
    %51 = arith.subf %50, %49 : vector<8x128xf32>
    %52 = arith.mulf %48, %51 : vector<8x128xf32>
    %53 = arith.subf %45, %52 : vector<8x128xf32>
    %cst_15 = arith.constant 5.000000e+00 : f32
    %54 = vector.broadcast %cst_15 : f32 to vector<8x128xf32>
    %55 = arith.addf %12, %54 : vector<8x128xf32>
    %56 = tpu.reciprocal %55 {approx = true} : vector<8x128xf32> -> vector<8x128xf32>
    %57 = arith.mulf %55, %56 : vector<8x128xf32>
    %cst_16 = arith.constant 2.000000e+00 : f32
    %58 = vector.broadcast %cst_16 : f32 to vector<8x128xf32>
    %59 = arith.subf %58, %57 : vector<8x128xf32>
    %60 = arith.mulf %56, %59 : vector<8x128xf32>
    %61 = arith.subf %53, %60 : vector<8x128xf32>
    %cst_17 = arith.constant 6.000000e+00 : f32
    %62 = vector.broadcast %cst_17 : f32 to vector<8x128xf32>
    %63 = arith.addf %12, %62 : vector<8x128xf32>
    %64 = tpu.reciprocal %63 {approx = true} : vector<8x128xf32> -> vector<8x128xf32>
    %65 = arith.mulf %63, %64 : vector<8x128xf32>
    %cst_18 = arith.constant 2.000000e+00 : f32
    %66 = vector.broadcast %cst_18 : f32 to vector<8x128xf32>
    %67 = arith.subf %66, %65 : vector<8x128xf32>
    %68 = arith.mulf %64, %67 : vector<8x128xf32>
    %69 = arith.mulf %68, %68 : vector<8x128xf32>
    %70 = math.log %63 : vector<8x128xf32>
    %cst_19 = arith.constant 5.000000e-01 : f32
    %71 = vector.broadcast %cst_19 : f32 to vector<8x128xf32>
    %72 = arith.mulf %71, %68 : vector<8x128xf32>
    %73 = arith.subf %70, %72 : vector<8x128xf32>
    %cst_20 = arith.constant 0.0075757578 : f32
    %74 = vector.broadcast %cst_20 : f32 to vector<8x128xf32>
    %75 = arith.mulf %69, %74 : vector<8x128xf32>
    %cst_21 = arith.constant 0.00416666688 : f32
    %76 = vector.broadcast %cst_21 : f32 to vector<8x128xf32>
    %77 = arith.subf %76, %75 : vector<8x128xf32>
    %78 = arith.mulf %69, %77 : vector<8x128xf32>
    %cst_22 = arith.constant 0.0039682542 : f32
    %79 = vector.broadcast %cst_22 : f32 to vector<8x128xf32>
    %80 = arith.subf %79, %78 : vector<8x128xf32>
    %81 = arith.mulf %69, %80 : vector<8x128xf32>
    %cst_23 = arith.constant 0.00833333377 : f32
    %82 = vector.broadcast %cst_23 : f32 to vector<8x128xf32>
    %83 = arith.subf %82, %81 : vector<8x128xf32>
    %84 = arith.mulf %69, %83 : vector<8x128xf32>
    %cst_24 = arith.constant 0.0833333358 : f32
    %85 = vector.broadcast %cst_24 : f32 to vector<8x128xf32>
    %86 = arith.subf %85, %84 : vector<8x128xf32>
    %87 = arith.mulf %69, %86 : vector<8x128xf32>
    %88 = arith.subf %73, %87 : vector<8x128xf32>
    %89 = arith.addf %61, %88 : vector<8x128xf32>
    %90 = arith.subf %0, %1 : vector<8x128xf32>
    %cst_25 = arith.constant 3.14159274 : f32
    %91 = vector.broadcast %cst_25 : f32 to vector<8x128xf32>
    %92 = arith.mulf %91, %90 : vector<8x128xf32>
    %93 = math.cos %92 : vector<8x128xf32>
    %94 = math.sin %92 : vector<8x128xf32>
    %95 = tpu.reciprocal %94 {approx = true} : vector<8x128xf32> -> vector<8x128xf32>
    %96 = arith.mulf %94, %95 : vector<8x128xf32>
    %cst_26 = arith.constant 2.000000e+00 : f32
    %97 = vector.broadcast %cst_26 : f32 to vector<8x128xf32>
    %98 = arith.subf %97, %96 : vector<8x128xf32>
    %99 = arith.mulf %95, %98 : vector<8x128xf32>
    %100 = arith.mulf %93, %99 : vector<8x128xf32>
    %cst_27 = arith.constant 3.14159274 : f32
    %101 = vector.broadcast %cst_27 : f32 to vector<8x128xf32>
    %102 = arith.mulf %101, %100 : vector<8x128xf32>
    %103 = arith.subf %89, %102 : vector<8x128xf32>
    %104 = arith.select %9, %103, %89 : vector<8x128xi1>, vector<8x128xf32>
    %105 = tpu.bitcast %0 : vector<8x128xf32> -> vector<8x128xi32>
    %c0_i32 = arith.constant 0 : i32
    %106 = vector.broadcast %c0_i32 : i32 to vector<8x128xi32>
    %107 = arith.cmpi slt, %105, %106 : vector<8x128xi32>
    %cst_28 = arith.constant 0x7F800000 : f32
    %cst_29 = arith.constant 0xFF800000 : f32
    %108 = vector.broadcast %cst_28 : f32 to vector<8x128xf32>
    %109 = vector.broadcast %cst_29 : f32 to vector<8x128xf32>
    %110 = arith.select %107, %108, %109 : vector<8x128xi1>, vector<8x128xf32>
    %cst_30 = arith.constant 0x7FC00000 : f32
    %111 = vector.broadcast %cst_30 : f32 to vector<8x128xf32>
    %112 = arith.select %7, %111, %104 : vector<8x128xi1>, vector<8x128xf32>
    %113 = arith.select %4, %110, %112 : vector<8x128xi1>, vector<8x128xf32>
    %cst_31 = arith.constant 0x7F800000 : f32
    %114 = vector.broadcast %cst_31 : f32 to vector<8x128xf32>
    %115 = arith.cmpf oeq, %0, %114 : vector<8x128xf32>
    %cst_32 = arith.constant 0x7F800000 : f32
    %116 = vector.broadcast %cst_32 : f32 to vector<8x128xf32>
    %117 = arith.select %115, %116, %113 : vector<8x128xi1>, vector<8x128xf32>
    %c0_33 = arith.constant 0 : index
    %c0_34 = arith.constant 0 : index
    %118 = vector.load %arg2[%c0_33, %c0_34] : memref<8x128xf32, #tpu.memory_space<vmem>>, vector<8x128xf32>
    tpu.vector_store %arg2[%c0_33, %c0_34], %117 {strides = array<i32>} : memref<8x128xf32, #tpu.memory_space<vmem>>, vector<8x128xf32>,
    return
  }
  func.func @transform_0(%arg0: i32) -> (i32, i32) {
    %c0_i32 = arith.constant 0 : i32
    %c0_i32_0 = arith.constant 0 : i32
    return %arg0, %c0_i32 : i32, i32
  }
  func.func @transform_1(%arg0: i32) -> (i32, i32) {
    %c0_i32 = arith.constant 0 : i32
    %c0_i32_0 = arith.constant 0 : i32
    return %arg0, %c0_i32 : i32, i32
  }
}

</mosaic_0001>

<bundles_post_ra>
// kernel: digamma_pallas.1
= control target key start
LH: loop header
LB: loop body
LE: loop exit
PB: predicated region body
PF: predicated region fallthrough
CT: control target
= control target key end

     0   :  { %s539_s6 = smov 0   ;;  %s627_s0 = inlined_call_operand.vmem [shape: f32[16,128], index: 0, kind: input, shape index: {}]   ;;  %s628_s1 = inlined_call_operand.vmem [shape: f32[16,128], index: 1, kind: output, shape index: {}]  }
   0x1 LB: > { %s456_s7 = sadd.s32 4294967295, %s520_s6   ;;  %p460_p0 = scmp.ge.s32.totalorder %s520_s6, 1  ;;  %s520_s6 = sphi %s539_s6, %s11_s6  }
   0x2   : > { %p86_p1 = scmp.lt.s32.totalorder %s520_s6, 3 }
   0x4   : > { %p87_p2 = pnand %p460_p0, %p86_p1 }
   0x5   : > { %p104_p3 = scmp.lt.s32.totalorder (!%p87_p2), %s456_s7, 1  ;;  %v522_v14 = vmov (!%p87_p2), 683565275   ;;  %v523_v16 = vmov (!%p87_p2), 2475754826  }
   0x6   : > { %90 = sbr.rel (%p87_p2) target bundleno = 130 (0x82), region = 24  ;;  %v524_v20 = vmov (!%p87_p2), 2131351028   ;;  %v525_v23 = vmov (!%p87_p2), 2102212464  }
   0x7   : > { %v526_v29 = vmov (!%p87_p2), 920167782   ;;  %v527_v34 = vmov (!%p87_p2), 1326507024  }
   0xd   : > { %s632_s7 = smov (!%p104_p3, %s456_s7), 1 }
   0xe   : > { %s461_s8 = sshll.u32 %s632_s7, 3 }
   0xf   : > { %s107_s11 = scalar_lea.vmem %s627_s0, %s461_s8  ;;  %s111_s14 = scalar_lea.vmem %s628_s1, %s461_s8 }
  0x10   : > { %v555_v0 = vld [vmem:[%s107_s11] sm:$0xff] }
  0x11   : > { %v113_v1 = vfloor.f32 %v555_v0  ;;  %vm116_vm0 = vcmp.lt.f32.partialorder %v555_v0, 0.0  ;;  %v119_v37 = vsub.f32 1.0, %v555_v0  ;;  %vm118_vm8 = vcmp.lt.f32.partialorder %v555_v0, 0.5 }
  0x13   : > { %vm114_vm1 = vcmp.eq.f32.partialorder %v555_v0, %v113_v1  ;;  %v178_v2 = vsub.f32 %v555_v0, %v113_v1  ;;  %v120_v54 = vsel %vm118_vm8, %v119_v37, %v555_v0 }
  0x14   : > { %vm561_vm2 = vmand %vm116_vm0, %vm114_vm1  ;;  %v582_v58 = vadd.f32 6.0, %v120_v54 }
  0x15   : > { %v565_v4 = vmul.f32 3.1415927, %v178_v2 }
  0x16   : > { %492 = vrcp.f32 %v582_v58 }
  0x17   : > { %v183_v5 = vand.u32 2139095040, %v565_v4  ;;  %v180_v11 = vand.u32 2147483647, %v565_v4  ;;  %494 = vrcp.f32 %v120_v54  ;;  %vm182_vm11 = vcmp.lt.s32.totalorder %v565_v4, 0 }
  0x18   : > { %vm272_vm15 = vweird.f32 %v565_v4 }
  0x19   : > { %v184_v6 = vshrl.u32 %v183_v5, 23  ;;  %v187_v13 = vand.u32 8388607, %v180_v11  ;;  %vm181_vm12 = vcmp.le.f32.partialorder %v180_v11, 0.7853982 }
  0x1b   : > { %v463_v7 = vadd.s32 4294967169, %v184_v6  ;;  %v188_v25 = vor.u32 8388608, %v187_v13 }
  0x1d   : > { %v190_v8 = vadd.s32 1, %v463_v7  ;;  %v228_v41 = vshll.u32 %v188_v25, 8 }
  0x1f   : > { %vm191_vm3 = vcmp.gt.s32.totalorder %v190_v8, 0 }
  0x20   : > { %v192_v9 = vsel %vm191_vm3, %v190_v8, 0  ;;  %v493_v6 = vpop.eup %492 }
  0x21   : > { %v194_v10 = vand.u32 31, %v192_v9  ;;  %v193_v18 = vshrl.u32 %v192_v9, 5  ;;  %v159_v8 = vmul.f32 %v493_v6, %v582_v58 }
  0x23   : > { %v195_v12 = vsub.s32 32, %v194_v10  ;;  %v197_v15 = vshll.u32 %v522_v14, %v194_v10  ;;  %v200_v17 = vshll.u32 %v523_v16, %v194_v10  ;;  %v203_v22 = vshll.u32 %v524_v20, %v194_v10 }
  0x24   : > { %v206_v26 = vshll.u32 %v525_v23, %v194_v10  ;;  %v209_v31 = vshll.u32 %v526_v29, %v194_v10  ;;  %vm212_vm4 = vcmp.lt.s32.totalorder %v193_v18, 1  ;;  %vm214_vm5 = vcmp.lt.s32.totalorder %v193_v18, 3 }
  0x25   : > { %v198_v19 = vshrl.u32 %v523_v16, %v195_v12  ;;  %v201_v21 = vshrl.u32 %v524_v20, %v195_v12  ;;  %v204_v24 = vshrl.u32 %v525_v23, %v195_v12  ;;  %v207_v30 = vshrl.u32 %v526_v29, %v195_v12 }
  0x26   : > { %v196_v32 = vshrl.u32 %v522_v14, %v195_v12  ;;  %v210_v35 = vshrl.u32 %v527_v34, %v195_v12  ;;  %vm215_vm6 = vcmp.lt.s32.totalorder %v193_v18, 4  ;;  %vm213_vm7 = vcmp.lt.s32.totalorder %v193_v18, 2 }
  0x27   : > { %v199_v27 = vor.u32 %v198_v19, %v197_v15  ;;  %v202_v28 = vor.u32 %v201_v21, %v200_v17  ;;  %v205_v33 = vor.u32 %v204_v24, %v203_v22  ;;  %v208_v36 = vor.u32 %v207_v30, %v206_v26 }
  0x28   : > { %v211_v38 = vor.u32 %v210_v35, %v209_v31  ;;  %v160_v12 = vsub.f32 2.0, %v159_v8  ;;  %v127_v15 = vadd.f32 1.0, %v120_v54  ;;  %v133_v22 = vadd.f32 2.0, %v120_v54  ;;  %v495_v31 = vpop.eup %494 }
  0x29   : > { %v217_v39 = vsel %vm215_vm6, %v205_v33, 2102212464  ;;  %v220_v40 = vsel %vm212_vm4, %v199_v27, %v202_v28  ;;  %v216_v42 = vsel %vm212_vm4, %v196_v32, %v199_v27  ;;  %v221_v44 = vsel %vm215_vm6, %v208_v36, 920167782 }
  0x2a   : > { %v218_v43 = vsel %vm214_vm5, %v202_v28, %v217_v39  ;;  %v224_v45 = vsel %vm212_vm4, %v202_v28, %v205_v33  ;;  %v222_v46 = vsel %vm214_vm5, %v205_v33, %v221_v44  ;;  %v225_v47 = vsel %vm215_vm6, %v211_v38, 1326507024 }
  0x2b   : > { %v223_v48 = vsel %vm213_vm7, %v220_v40, %v222_v46  ;;  %v226_v49 = vsel %vm214_vm5, %v208_v36, %v225_v47  ;;  %v219_v50 = vsel %vm213_vm7, %v216_v42, %v218_v43  ;;  %v590_v19 = vmul.f32 %v493_v6, %v160_v12 }
  0x2c   : > { %v227_v51 = vsel %vm213_vm7, %v224_v45, %v226_v49  ;;  %v573_v52 = vmul.u32.u64.low %v228_v41, %v223_v48  ;;  %v574_v53 = vmul.u32.u64.high %v228_v41, %v223_v48, %v573_v52  ;;  %v235_v57 = vmul.u32 %v228_v41, %v219_v50 }
  0x2d   : > { %v579_v55 = vmul.u32.u64.low %v228_v41, %v227_v51  ;;  %v580_v56 = vmul.u32.u64.high %v228_v41, %v227_v51, %v579_v55  ;;  %496 = vrcp.f32 %v127_v15  ;;  %v594_v25 = vmul.f32 %v590_v19, %v590_v19 }
  0x2e   : > { %v238_v59 = vadd.s32 1, %v574_v53  ;;  %498 = vrcp.f32 %v133_v22  ;;  %v139_v28 = vadd.f32 3.0, %v120_v54  ;;  %v145_v34 = vadd.f32 4.0, %v120_v54 }
  0x2f   : > { %vm237_vm9 = vc.u32 %v580_v56, %v573_v52  ;;  %v236_v13 = vadd.s32 %v573_v52, %v580_v56  ;;  %v167_v32 = vmul.f32 0.007575758, %v594_v25  ;;  %v123_v37 = vmul.f32 %v495_v31, %v120_v54 }
  0x30   : > { %v239_v60 = vsel %vm237_vm9, %v238_v59, %v574_v53  ;;  %500 = vrcp.f32 %v139_v28  ;;  %v151_v41 = vadd.f32 5.0, %v120_v54  ;;  %vm396_vm5 = vcmp.lt.s32.totalorder %v555_v0, 0 }
  0x31   : > { %v240_v61 = vadd.s32 %v239_v60, %v235_v57  ;;  %v168_v39 = vsub.f32 0.004166667, %v167_v32  ;;  %502 = vrcp.f32 %v145_v34  ;;  %v124_v44 = vsub.f32 2.0, %v123_v37 }
  0x32   : > { %vm115_vm6 = vcmp.eq.f32.partialorder %v555_v0, 0.0  ;;  %vm400_vm7 = vcmp.eq.f32.partialorder %v555_v0, inf }
  0x33   : > { %v241_v62 = vadd.s32 536870912, %v240_v61  ;;  %v169_v47 = vmul.f32 %v168_v39, %v594_v25  ;;  %v125_v11 = vmul.f32 %v495_v31, %v124_v44 }
  0x35   : > { %v242_v63 = vshrl.u32 %v241_v62, 30  ;;  %v170_v52 = vsub.f32 0.003968254, %v169_v47  ;;  %v126_v55 = vsub.f32 0.0, %v125_v11 }
  0x37   : > { %v243_v1 = vshll.u32 %v242_v63, 30  ;;  %v266_v30 = vsub.s32 4, %v242_v63  ;;  %v497_v38 = vpop.eup %496 }
  0x38   : > { %v129_v45 = vmul.f32 %v497_v38, %v127_v15  ;;  %v499_v46 = vpop.eup %498 }
  0x39   : > { %v244_v2 = vsub.s32 %v240_v61, %v243_v1  ;;  %v267_v36 = vsel %vm182_vm11, %v266_v30, %v242_v63  ;;  %v135_v50 = vmul.f32 %v499_v46, %v133_v22  ;;  %v171_v61 = vmul.f32 %v170_v52, %v594_v25 }
  0x3a   : > { %v269_v43 = vsel %vm181_vm12, 0, %v267_v36  ;;  %v130_v49 = vsub.f32 2.0, %v129_v45  ;;  %v501_v51 = vpop.eup %500 }
  0x3b   : > { %v246_v5 = vsub.s32 0, %v244_v2  ;;  %v376_v48 = vadd.s32 3, %v269_v43  ;;  %v503_v54 = vpop.eup %502  ;;  %v136_v57 = vsub.f32 2.0, %v135_v50  ;;  %v141_v59 = vmul.f32 %v501_v51, %v139_v28 }
  0x3c   : > { %v131_v56 = vmul.f32 %v497_v38, %v130_v49  ;;  %v147_v1 = vmul.f32 %v503_v54, %v145_v34 }
  0x3d   : > { %v464_v7 = vmin.u32 %v246_v5, %v244_v2  ;;  %v377_v53 = vand.u32 3, %v376_v48 }
  0x3e   : > { %v132_v6 = vsub.f32 %v126_v55, %v131_v56 }
  0x3f   : > { %v248_v9 = vclz %v464_v7  ;;  %vm382_vm13 = vcmp.eq.s32.totalorder %v377_v53, 2  ;;  %vm379_vm14 = vcmp.eq.s32.totalorder %v377_v53, 0  ;;  %vm378_vm0 = vcmp.lt.s32.totalorder %v377_v53, 2 }
  0x40   : > { %v142_v7 = vsub.f32 2.0, %v141_v59 }
  0x41   : > { %v465_v10 = vadd.s32 4294967294, %v248_v9  ;;  %v172_v9 = vsub.f32 0.008333334, %v171_v61 }
  0x43   : > { %vm466_vm10 = vcmp.lt.s32.totalorder %v465_v10, 0 }
  0x44   : > { %v251_v14 = vsel %vm466_vm10, 0, %v465_v10 }
  0x45   : > { %v252_v16 = vsub.s32 32, %v251_v14  ;;  %v253_v17 = vshll.u32 %v244_v2, %v251_v14  ;;  %v256_v18 = vsub.s32 4294967266, %v251_v14 }
  0x47   : > { %v254_v20 = vshrl.u32 %v236_v13, %v252_v16  ;;  %v257_v21 = vadd.s32 127, %v256_v18  ;;  %v143_v16 = vmul.f32 %v501_v51, %v142_v7 }
  0x49   : > { %v255_v23 = vor.u32 %v254_v20, %v253_v17  ;;  %v258_v24 = vshll.u32 %v257_v21, 23  ;;  %v148_v17 = vsub.f32 2.0, %v147_v1  ;;  %v173_v20 = vmul.f32 %v172_v9, %v594_v25 }
  0x4a   : > { %v273_v21 = vand.u32 3, %v269_v43 }
  0x4b   : > { %v259_v26 = vor.u32 4788187, %v258_v24  ;;  %v262_v27 = vcvt.s32.f32 %v255_v23  ;;  %v149_v23 = vmul.f32 %v503_v54, %v148_v17  ;;  %v174_v28 = vsub.f32 0.083333336, %v173_v20 }
  0x4c   : > { %vm275_vm1 = vcmp.eq.s32.totalorder %v273_v21, 0  ;;  %vm278_vm3 = vcmp.eq.s32.totalorder %v273_v21, 2  ;;  %vm274_vm4 = vcmp.lt.s32.totalorder %v273_v21, 2 }
  0x4d   : > { %v260_v29 = vand.u32 2147483647, %v259_v26  ;;  %v175_v34 = vmul.f32 %v174_v28, %v594_v25  ;;  %v528_v25 = vmov -inf  }
  0x4f   : > { %v263_v33 = vmul.f32 %v262_v27, %v260_v29  ;;  %v165_v27 = vmul.f32 0.5, %v590_v19 }
  0x51   : > { %v264_v35 = vxor.u32 2147483648, %v263_v33 }
  0x53   : > { %v265_v40 = vsel %vm182_vm11, %v264_v35, %v263_v33 }
  0x54   : > { %v268_v42 = vsel %vm181_vm12, %v565_v4, %v265_v40 }
  0x55   : > { %504 = vcosq.f32 %v268_v42 }
  0x56   : > { %506 = vsinq.f32 %v268_v42 }
  0x57   : > { %508 = vrcp.f32 %v151_v41 }
  0x58   : > { %510 = vlog2.f32 %v582_v58  ;;  %v137_v58 = vmul.f32 %v499_v46, %v136_v57  ;;  %v397_v46 = vsel %vm396_vm5, inf, %v528_v25 }
  0x5a   : > { %v138_v15 = vsub.f32 %v132_v6, %v137_v58 }
  0x5c   : > { %v144_v22 = vsub.f32 %v138_v15, %v143_v16 }
  0x5e   : > { %v150_v31 = vsub.f32 %v144_v22, %v149_v23 }
  0x5f   : > { %v505_v60 = vpop.eup %504 }
  0x60   : > { %v507_v62 = vpop.eup %506  ;;  %v279_v63 = vxor.u32 2147483648, %v505_v60 }
  0x61   : > { %v276_v2 = vxor.u32 2147483648, %v507_v62  ;;  %v509_v5 = vpop.eup %508 }
  0x62   : > { %v384_v8 = vsel %vm382_vm13, %v279_v63, %v507_v62  ;;  %v153_v13 = vmul.f32 %v509_v5, %v151_v41  ;;  %v511_v18 = vpop.eup %510  ;;  %v280_v30 = vsel %vm278_vm3, %v279_v63, %v507_v62 }
  0x63   : > { %v381_v10 = vsel %vm379_vm14, %v505_v60, %v276_v2  ;;  %v164_v26 = vmul.f32 0.6931472, %v511_v18  ;;  %v277_v29 = vsel %vm275_vm1, %v505_v60, %v276_v2 }
  0x64   : > { %v385_v12 = vsel %vm378_vm0, %v381_v10, %v384_v8  ;;  %v154_v24 = vsub.f32 2.0, %v153_v13  ;;  %v281_v36 = vsel %vm274_vm4, %v277_v29, %v280_v30 }
  0x65   : > { %v386_v14 = vsel %vm272_vm15, nan, %v385_v12  ;;  %v166_v33 = vsub.f32 %v164_v26, %v165_v27  ;;  %v282_v19 = vsel %vm272_vm15, nan, %v281_v36 }
  0x66   : > { %512 = vrcp.f32 %v386_v14  ;;  %v155_v32 = vmul.f32 %v509_v5, %v154_v24 }
  0x67   : > { %v176_v39 = vsub.f32 %v166_v33, %v175_v34 }
  0x68   : > { %v156_v38 = vsub.f32 %v150_v31, %v155_v32 }
  0x6a   : > { %v177_v42 = vadd.f32 %v176_v39, %v156_v38 }
  0x70   : > { %v513_v35 = vpop.eup %512 }
  0x71   : > { %v388_v37 = vmul.f32 %v513_v35, %v386_v14 }
  0x73   : > { %v389_v40 = vsub.f32 2.0, %v388_v37 }
  0x75   : > { %v390_v41 = vmul.f32 %v513_v35, %v389_v40 }
  0x77   : > { %v391_v43 = vmul.f32 %v390_v41, %v282_v19 }
  0x79   : > { %v392_v44 = vmul.f32 3.1415927, %v391_v43 }
  0x7b   : > { %v393_v45 = vsub.f32 %v177_v42, %v392_v44 }
  0x7d   : > { %v394_v47 = vsel %vm118_vm8, %v393_v45, %v177_v42 }
  0x7e   : > { %v398_v4 = vsel %vm561_vm2, nan, %v394_v47 }
  0x7f   : > { %v399_v48 = vsel %vm115_vm6, %v397_v46, %v398_v4 }
  0x80   : > { %v401_v11 = vsel %vm400_vm7, inf, %v399_v48 }
  0x81   : > { %402 = vst [vmem:[%s111_s14] sm:$0xff] %v401_v11 }
  0x82 PF: > { %s11_s6 = sadd.s32 1, %s520_s6  }
  0x83   : > { %p8_p4 = scmp.ge.s32.totalorder %s11_s6, 4  }
  0x85   :  { %10 = sbr.rel (!%p8_p4) target bundleno = 1 (0x1), region = 54 }

</bundles_post_ra>
